<compile_context>
chip_gen: v7x
topology: tpu7x:2x2x1
jax: 0.10.0
libtpu: 0.0.40
codegen_flags: <defaults>
</compile_context>

<pallas_src>
import functools
import math

import jax
import jax.numpy as jnp
from jax.experimental import pallas as pl
from jax.experimental.pallas import tpu as pltpu


def _mha_head_kernel(x_ref, wqkv_ref, bqkv_ref, wo_ref, bo_ref, o_ref,
                     acc_ref, *, head_dim, mxu_dtype):
    """One grid step = one (batch, head) pair."""
    h = pl.program_id(1)
    d = head_dim

    x = x_ref[0]                       # (N, E)  float32
    wqkv = wqkv_ref[0]                 # (E, 3D) -- 1/sqrt(E) folded into Q cols
    bqkv = bqkv_ref[0]                 # (1, 3D)
    wo = wo_ref[0]                     # (D, E)  -- this head's projection rows

    # Fused per-head Q/K/V projection: one wide MXU pass instead of three.
    qkv = jnp.dot(x, wqkv, preferred_element_type=jnp.float32) + bqkv   # (N,3D)
    q = qkv[:, :d].astype(mxu_dtype)          # static lane slices, no transposes
    k = qkv[:, d:2 * d].astype(mxu_dtype)
    v = qkv[:, 2 * d:].astype(mxu_dtype)

    # logits = (q / sqrt(E)) @ k^T   (scale already folded into wqkv/bqkv)
    logits = jax.lax.dot_general(
        q, k, dimension_numbers=(((1,), (1,)), ((), ())),
        preferred_element_type=jnp.float32)                             # (N, N)

    # Numerically-stable softmax; reciprocal of the (N, 1) sums hits the EUP.
    m = jnp.max(logits, axis=-1, keepdims=True)
    e = jnp.exp(logits - m)
    s = jnp.sum(e, axis=-1, keepdims=True)
    att = e * pl.reciprocal(s, approx=True)                             # (N, N)

    # context = att @ v, then this head's slice of the output projection.
    ctx = jnp.dot(att.astype(mxu_dtype), v,
                  preferred_element_type=jnp.float32)                   # (N, D)
    partial = jnp.dot(ctx, wo, preferred_element_type=jnp.float32)      # (N, E)

    # Accumulate the output projection over heads in an f32 VMEM scratch.
    @pl.when(h == 0)
    def _():
        acc_ref[...] = jnp.broadcast_to(bo_ref[...], acc_ref.shape)

    acc_ref[...] += partial

    @pl.when(h == pl.num_programs(1) - 1)
    def _():
        o_ref[0] = acc_ref[...].astype(o_ref.dtype)


def prepare_mha_params(params, *, emb_size, num_heads):
    """One-time parameter preparation -- hoist out of the forward pass.

    Converts torch nn.Linear (out, in) weights to (in, out), fuses Q/K/V into
    one per-head weight of shape (H, E, 3*D), folds the 1/sqrt(emb_size)
    attention scale into the Q columns, and slices the output projection into
    per-head (D, E) row blocks.
    """
    E, H = emb_size, num_heads
    assert E % H == 0
    D = E // H
    inv_scale = 1.0 / math.sqrt(E)

    def cols_per_head(w_out_in, scale=1.0):
        # torch (out, in) -> (in, out) -> (H, E_in, D) per-head column slices.
        w = jnp.asarray(w_out_in).T * scale
        return w.reshape(E, H, D).transpose(1, 0, 2)

    def bias_per_head(b, scale=1.0):
        return (jnp.asarray(b) * scale).reshape(H, 1, D)

    wqkv = jnp.concatenate(
        [cols_per_head(params['Wq'], inv_scale),
         cols_per_head(params['Wk']),
         cols_per_head(params['Wv'])], axis=-1)                     # (H, E, 3D)
    bqkv = jnp.concatenate(
        [bias_per_head(params['bq'], inv_scale),
         bias_per_head(params['bk']),
         bias_per_head(params['bv'])], axis=-1)                     # (H, 1, 3D)
    wo = jnp.asarray(params['Wo']).T.reshape(H, D, E)               # (H, D, E)
    bo = jnp.asarray(params['bo']).reshape(1, E)                    # (1, E)
    return {'wqkv': wqkv, 'bqkv': bqkv, 'wo': wo, 'bo': bo}


def multi_head_attention(x, prepared, *, num_heads, mxu_dtype=jnp.bfloat16):
    """x: (B, N, E). `prepared`: output of prepare_mha_params (call it once)."""
    B, N, E = x.shape
    H = num_heads
    assert E % H == 0
    D = E // H
    # Production note: choose E a multiple of 128 and N a multiple of 8 so the
    # (., N, E) blocks stay lane-dense (unmasked stores). The small demo shapes
    # work because every block equals the full array dims.

    kernel = functools.partial(_mha_head_kernel, head_dim=D, mxu_dtype=mxu_dtype)

    # Advisory cost estimate so XLA schedules surrounding ops sensibly.
    flops = int(B * (8 * N * E * E + 4 * N * N * E))
    transcendentals = int(B * H * N * N)
    bytes_accessed = int(4 * (2 * B * N * E
                              + B * H * (3 * E * D + 3 * D + D * E + E)))
    cost = pl.CostEstimate(flops=flops, transcendentals=transcendentals,
                           bytes_accessed=bytes_accessed)

    # Rough per-step VMEM footprint (double-buffered blocks + scratch) with
    # headroom; keeps us well under v7x's 64 MiB physical VMEM.
    block_bytes = 4 * (2 * N * E + 3 * E * D + 3 * D + D * E + E)
    vmem_limit = int(min(48 * 1024 * 1024,
                         max(16 * 1024 * 1024, 4 * block_bytes + 4 * N * E)))

    return pl.pallas_call(
        kernel,
        out_shape=jax.ShapeDtypeStruct((B, N, E), x.dtype),
        grid_spec=pltpu.PrefetchScalarGridSpec(
            num_scalar_prefetch=0,
            grid=(B, H),
            in_specs=[
                pl.BlockSpec((1, N, E), lambda b, h: (b, 0, 0)),       # x
                pl.BlockSpec((1, E, 3 * D), lambda b, h: (h, 0, 0)),   # Wqkv[h]
                pl.BlockSpec((1, 1, 3 * D), lambda b, h: (h, 0, 0)),   # bqkv[h]
                pl.BlockSpec((1, D, E), lambda b, h: (h, 0, 0)),       # Wo[h]
                pl.BlockSpec((1, E), lambda b, h: (0, 0)),             # bo
            ],
            out_specs=pl.BlockSpec((1, N, E), lambda b, h: (b, 0, 0)),
            scratch_shapes=[pltpu.VMEM((N, E), jnp.float32)],
        ),
        compiler_params=pltpu.CompilerParams(
            dimension_semantics=("parallel", "arbitrary"),
            vmem_limit_bytes=vmem_limit),
        cost_estimate=cost,
    )(x, prepared['wqkv'], prepared['bqkv'], prepared['wo'], prepared['bo'])


def _reference(x, params, num_heads):
    """Plain-JAX reference mirroring the PyTorch forward (eval mode)."""
    B, N, E = x.shape
    H, D = num_heads, E // num_heads

    def lin(x, W, b):  # torch Linear: y = x @ W.T + b
        return jnp.einsum('bne,oe->bno', x, W) + b

    q = lin(x, params['Wq'], params['bq']).reshape(B, N, H, D).transpose(0, 2, 1, 3)
    k = lin(x, params['Wk'], params['bk']).reshape(B, N, H, D).transpose(0, 2, 1, 3)
    v = lin(x, params['Wv'], params['bv']).reshape(B, N, H, D).transpose(0, 2, 1, 3)
    energy = jnp.einsum('bhqd,bhkd->bhqk', q, k)
    att = jax.nn.softmax(energy / (E ** 0.5), axis=-1)
    out = jnp.einsum('bhqk,bhkd->bhqd', att, v)
    out = out.transpose(0, 2, 1, 3).reshape(B, N, E)
    return jnp.einsum('bne,oe->bno', out, params['Wo']) + params['bo']


if __name__ == "__main__":
    B, N, E, H = 2, 8, 32, 4

    key = jax.random.PRNGKey(0)
    keys = jax.random.split(key, 9)
    bound = 1.0 / math.sqrt(E)   # torch Linear default init range
    params = {
        'Wq': jax.random.uniform(keys[0], (E, E), jnp.float32, -bound, bound),
        'bq': jax.random.uniform(keys[1], (E,), jnp.float32, -bound, bound),
        'Wk': jax.random.uniform(keys[2], (E, E), jnp.float32, -bound, bound),
        'bk': jax.random.uniform(keys[3], (E,), jnp.float32, -bound, bound),
        'Wv': jax.random.uniform(keys[4], (E, E), jnp.float32, -bound, bound),
        'bv': jax.random.uniform(keys[5], (E,), jnp.float32, -bound, bound),
        'Wo': jax.random.uniform(keys[6], (E, E), jnp.float32, -bound, bound),
        'bo': jax.random.uniform(keys[7], (E,), jnp.float32, -bound, bound),
    }
    x = jax.random.normal(keys[8], (B, N, E), jnp.float32)

    # One-time parameter prep (per performance feedback: no per-call .T).
    prepared = prepare_mha_params(params, emb_size=E, num_heads=H)
    ref = _reference(x, params, H)

    # f32-operand MXU path: tight-ish tolerance (approx reciprocal still used).
    out_f32 = multi_head_attention(x, prepared, num_heads=H,
                                   mxu_dtype=jnp.float32)
    out_f32 = jax.block_until_ready(out_f32)
    assert out_f32.shape == (B, N, E)
    assert jnp.allclose(out_f32, ref, atol=5e-3, rtol=5e-3), "f32 path mismatch"

    # Default bf16-operand MXU path (peak-rate path on v6e/v7x), f32 accum.
    out = multi_head_attention(x, prepared, num_heads=H)
    out = jax.block_until_ready(out)
    assert out.shape == (B, N, E)
    assert jnp.allclose(out, ref, atol=2e-2, rtol=2e-2), "bf16 path mismatch"

    print("KERNEL_OK")
</pallas_src>

<mosaic_0001>
module attributes {stable_mosaic.version = 11 : i64} {
  func.func @_mha_head_kernel(%arg0: i32, %arg1: i32, %arg2: memref<1x8x32xf32, #tpu.memory_space<vmem>>, %arg3: memref<1x32x24xf32, #tpu.memory_space<vmem>>, %arg4: memref<1x1x24xf32, #tpu.memory_space<vmem>>, %arg5: memref<1x8x32xf32, #tpu.memory_space<vmem>>, %arg6: memref<1x32xf32, #tpu.memory_space<vmem>>, %arg7: memref<1x8x32xf32, #tpu.memory_space<vmem>>, %arg8: memref<8x32xf32, #tpu.memory_space<vmem>>) attributes {dimension_semantics = [#tpu.dimension_semantics<parallel>, #tpu.dimension_semantics<arbitrary>], iteration_bounds = array<i64: 2, 4>, scalar_prefetch = 0 : i64, scratch_operands = 1 : i64, tpu.core_type = #tpu.core_type<tc>, window_params = [{transform_indices = @transform_0, window_bounds = array<i64: 1, 8, 32>}, {transform_indices = @transform_1, window_bounds = array<i64: 1, 32, 24>}, {transform_indices = @transform_2, window_bounds = array<i64: 1, 1, 24>}, {transform_indices = @transform_3, window_bounds = array<i64: 1, 8, 32>}, {pipeline_mode = #tpu.pipeline_mode<synchronous>, transform_indices = @transform_4, window_bounds = array<i64: 1, 32>}, {transform_indices = @transform_5, window_bounds = array<i64: 1, 8, 32>}]} {
    %c0 = arith.constant 0 : index
    %c0_0 = arith.constant 0 : index
    %c0_1 = arith.constant 0 : index
    %0 = vector.load %arg2[%c0, %c0_0, %c0_1] : memref<1x8x32xf32, #tpu.memory_space<vmem>>, vector<1x8x32xf32>
    %1 = vector.shape_cast %0 : vector<1x8x32xf32> to vector<8x32xf32>
    %c0_2 = arith.constant 0 : index
    %c0_3 = arith.constant 0 : index
    %c0_4 = arith.constant 0 : index
    %2 = vector.load %arg3[%c0_2, %c0_3, %c0_4] : memref<1x32x24xf32, #tpu.memory_space<vmem>>, vector<1x32x24xf32>
    %3 = vector.shape_cast %2 : vector<1x32x24xf32> to vector<32x24xf32>
    %c0_5 = arith.constant 0 : index
    %c0_6 = arith.constant 0 : index
    %c0_7 = arith.constant 0 : index
    %4 = vector.load %arg4[%c0_5, %c0_6, %c0_7] : memref<1x1x24xf32, #tpu.memory_space<vmem>>, vector<1x1x24xf32>
    %5 = vector.shape_cast %4 : vector<1x1x24xf32> to vector<1x24xf32>
    %c0_8 = arith.constant 0 : index
    %c0_9 = arith.constant 0 : index
    %c0_10 = arith.constant 0 : index
    %6 = vector.load %arg5[%c0_8, %c0_9, %c0_10] : memref<1x8x32xf32, #tpu.memory_space<vmem>>, vector<1x8x32xf32>
    %7 = vector.shape_cast %6 : vector<1x8x32xf32> to vector<8x32xf32>
    %cst = arith.constant dense<0.000000e+00> : vector<8x24xf32>
    %8 = tpu.matmul %1, %3, %cst {dimension_numbers = #tpu.dot_dimension_numbers<[1], [0], [0], [1], [0, 0, 1, 1], [], []>} : vector<8x32xf32>, vector<32x24xf32>, vector<8x24xf32> -> vector<8x24xf32>
    %9 = vector.broadcast %5 : vector<1x24xf32> to vector<8x24xf32>
    %10 = arith.addf %8, %9 : vector<8x24xf32>
    %11 = vector.extract_strided_slice %10 {offsets = [0, 0], sizes = [8, 8], strides = [1, 1]} : vector<8x24xf32> to vector<8x8xf32>
    %12 = vector.extract_strided_slice %10 {offsets = [0, 8], sizes = [8, 8], strides = [1, 1]} : vector<8x24xf32> to vector<8x8xf32>
    %13 = vector.extract_strided_slice %10 {offsets = [0, 16], sizes = [8, 8], strides = [1, 1]} : vector<8x24xf32> to vector<8x8xf32>
    %cst_11 = arith.constant dense<0.000000e+00> : vector<8x8xf32>
    %14 = tpu.matmul %11, %12, %cst_11 {dimension_numbers = #tpu.dot_dimension_numbers<[1], [1], [0], [0], [0, 0, 1, 0], [], []>} : vector<8x8xf32>, vector<8x8xf32>, vector<8x8xf32> -> vector<8x8xf32>
    %cst_12 = arith.constant dense<0xFF800000> : vector<8xf32>
    %15 = vector.multi_reduction <maximumf>, %14, %cst_12 [1] : vector<8x8xf32> to vector<8xf32>
    %16 = vector.shape_cast %15 : vector<8xf32> to vector<8x1xf32>
    %17 = vector.broadcast %16 : vector<8x1xf32> to vector<8x8xf32>
    %18 = arith.subf %14, %17 : vector<8x8xf32>
    %19 = math.exp %18 : vector<8x8xf32>
    %cst_13 = arith.constant dense<0.000000e+00> : vector<8xf32>
    %20 = vector.multi_reduction <add>, %19, %cst_13 [1] : vector<8x8xf32> to vector<8xf32>
    %21 = vector.shape_cast %20 : vector<8xf32> to vector<8x1xf32>
    %22 = tpu.reciprocal %21 {approx = true} : vector<8x1xf32> -> vector<8x1xf32>
    %23 = vector.broadcast %22 : vector<8x1xf32> to vector<8x8xf32>
    %24 = arith.mulf %19, %23 : vector<8x8xf32>
    %cst_14 = arith.constant dense<0.000000e+00> : vector<8x8xf32>
    %25 = tpu.matmul %24, %13, %cst_14 {dimension_numbers = #tpu.dot_dimension_numbers<[1], [0], [0], [1], [0, 0, 1, 1], [], []>} : vector<8x8xf32>, vector<8x8xf32>, vector<8x8xf32> -> vector<8x8xf32>
    %cst_15 = arith.constant dense<0.000000e+00> : vector<8x32xf32>
    %26 = tpu.matmul %25, %7, %cst_15 {dimension_numbers = #tpu.dot_dimension_numbers<[1], [0], [0], [1], [0, 0, 1, 1], [], []>} : vector<8x8xf32>, vector<8x32xf32>, vector<8x32xf32> -> vector<8x32xf32>
    %c0_i32 = arith.constant 0 : i32
    %27 = arith.cmpi eq, %arg1, %c0_i32 : i32
    %28 = arith.extui %27 : i1 to i32
    %c0_i32_16 = arith.constant 0 : i32
    %29 = arith.cmpi ne, %28, %c0_i32_16 : i32
    scf.if %29 {
      %c0_22 = arith.constant 0 : index
      %c0_23 = arith.constant 0 : index
      %36 = vector.load %arg6[%c0_22, %c0_23] : memref<1x32xf32, #tpu.memory_space<vmem>>, vector<1x32xf32>
      %37 = vector.shape_cast %36 : vector<1x32xf32> to vector<1x32xf32>
      %38 = vector.broadcast %37 : vector<1x32xf32> to vector<8x32xf32>
      %c0_24 = arith.constant 0 : index
      %c0_25 = arith.constant 0 : index
      %39 = vector.load %arg8[%c0_24, %c0_25] : memref<8x32xf32, #tpu.memory_space<vmem>>, vector<8x32xf32>
      tpu.vector_store %arg8[%c0_24, %c0_25], %38 {strides = array<i32>} : memref<8x32xf32, #tpu.memory_space<vmem>>, vector<8x32xf32>,
    } else {
    }
    %c0_17 = arith.constant 0 : index
    %c0_18 = arith.constant 0 : index
    %30 = vector.load %arg8[%c0_17, %c0_18] : memref<8x32xf32, #tpu.memory_space<vmem>>, vector<8x32xf32>
    %31 = arith.addf %30, %26 : vector<8x32xf32>
    %c0_19 = arith.constant 0 : index
    %c0_20 = arith.constant 0 : index
    %32 = vector.load %arg8[%c0_19, %c0_20] : memref<8x32xf32, #tpu.memory_space<vmem>>, vector<8x32xf32>
    tpu.vector_store %arg8[%c0_19, %c0_20], %31 {strides = array<i32>} : memref<8x32xf32, #tpu.memory_space<vmem>>, vector<8x32xf32>,
    %c3_i32 = arith.constant 3 : i32
    %33 = arith.cmpi eq, %arg1, %c3_i32 : i32
    %34 = arith.extui %33 : i1 to i32
    %c0_i32_21 = arith.constant 0 : i32
    %35 = arith.cmpi ne, %34, %c0_i32_21 : i32
    scf.if %35 {
      %c0_22 = arith.constant 0 : index
      %c0_23 = arith.constant 0 : index
      %36 = vector.load %arg8[%c0_22, %c0_23] : memref<8x32xf32, #tpu.memory_space<vmem>>, vector<8x32xf32>
      %c0_24 = arith.constant 0 : index
      %c0_25 = arith.constant 0 : index
      %c0_26 = arith.constant 0 : index
      %37 = vector.load %arg7[%c0_24, %c0_25, %c0_26] : memref<1x8x32xf32, #tpu.memory_space<vmem>>, vector<1x8x32xf32>
      %38 = vector.shape_cast %37 : vector<1x8x32xf32> to vector<8x32xf32>
      %39 = vector.shape_cast %36 : vector<8x32xf32> to vector<1x8x32xf32>
      tpu.vector_store %arg7[%c0_24, %c0_25, %c0_26], %39 {strides = array<i32>} : memref<1x8x32xf32, #tpu.memory_space<vmem>>, vector<1x8x32xf32>,
    } else {
    }
    return
  }
  func.func @transform_0(%arg0: i32, %arg1: i32) -> (i32, i32, i32) {
    %c0_i32 = arith.constant 0 : i32
    %c0_i32_0 = arith.constant 0 : i32
    %c0_i32_1 = arith.constant 0 : i32
    return %arg0, %c0_i32, %c0_i32_0 : i32, i32, i32
  }
  func.func @transform_1(%arg0: i32, %arg1: i32) -> (i32, i32, i32) {
    %c0_i32 = arith.constant 0 : i32
    %c0_i32_0 = arith.constant 0 : i32
    %c0_i32_1 = arith.constant 0 : i32
    return %arg1, %c0_i32, %c0_i32_0 : i32, i32, i32
  }
  func.func @transform_2(%arg0: i32, %arg1: i32) -> (i32, i32, i32) {
    %c0_i32 = arith.constant 0 : i32
    %c0_i32_0 = arith.constant 0 : i32
    %c0_i32_1 = arith.constant 0 : i32
    return %arg1, %c0_i32, %c0_i32_0 : i32, i32, i32
  }
  func.func @transform_3(%arg0: i32, %arg1: i32) -> (i32, i32, i32) {
    %c0_i32 = arith.constant 0 : i32
    %c0_i32_0 = arith.constant 0 : i32
    %c0_i32_1 = arith.constant 0 : i32
    return %arg1, %c0_i32, %c0_i32_0 : i32, i32, i32
  }
  func.func @transform_4(%arg0: i32, %arg1: i32) -> (i32, i32) {
    %c0_i32 = arith.constant 0 : i32
    %c0_i32_0 = arith.constant 0 : i32
    %c0_i32_1 = arith.constant 0 : i32
    return %c0_i32, %c0_i32_0 : i32, i32
  }
  func.func @transform_5(%arg0: i32, %arg1: i32) -> (i32, i32, i32) {
    %c0_i32 = arith.constant 0 : i32
    %c0_i32_0 = arith.constant 0 : i32
    %c0_i32_1 = arith.constant 0 : i32
    return %arg0, %c0_i32, %c0_i32_0 : i32, i32, i32
  }
}

</mosaic_0001>

<bundles_post_ra>
// kernel: tpu_custom_call.1
= control target key start
LH: loop header
LB: loop body
LE: loop exit
PB: predicated region body
PF: predicated region fallthrough
CT: control target
= control target key end

     0   :  { %10 = vsyncpa [#allocation4], 0  ;;  %s1193_s0 = inlined_call_operand.vmem [shape: f32[2,8,32], index: 0, kind: input, shape index: {}]   ;;  %s1194_s1 = inlined_call_operand.vmem [shape: f32[4,32,24], index: 1, kind: input, shape index: {}]   ;;  %s1195_s2 = inlined_call_operand.vmem [shape: f32[4,1,24], index: 2, kind: input, shape index: {}]   ;;  %s1196_s3 = inlined_call_operand.vmem [shape: f32[4,8,32], index: 3, kind: input, shape index: {}]   ;;  %s1197_s4 = inlined_call_operand.vmem [shape: f32[1,32], index: 4, kind: input, shape index: {}]   ;;  %s1198_s5 = inlined_call_operand.hbm [shape: f32[2,8,32], index: 5, kind: output, shape index: {}]  }
   0x1   :  { %12 = vsyncpa [#allocation4 + $0x1], 0  ;;  %s1025_s18 = smov 0   ;;  %s1027_s19 = smov 0  }
   0x2   :  { %s1029_s20 = smov 0   ;;  %s1031_s21 = smov 0  }
   0x3   :  { %s1033_s22 = smov 0   ;;  %s1035_s23 = smov 0  }
   0x4   :  { %s1037_s24 = smov 0   ;;  %s1039_s25 = smov 0  }
   0x5 LB: > { %s746_s26 = sadd.s32 4294967295, %s987_s25   ;;  %s747_s27 = sadd.s32 4294967294, %s987_s25   ;;  %s987_s25 = sphi %s1039_s25, %s18_s25   ;;  %s983_s24 = sphi %s1037_s24, %s1207_s24   ;;  %s979_s23 = sphi %s1035_s23, %s1206_s23   ;;  %s975_s22 = sphi %s1033_s22, %s1205_s22   ;;  %s971_s21 = sphi %s1031_s21, %s1204_s21   ;;  %s967_s20 = sphi %s1029_s20, %s1203_s20   ;;  %s963_s19 = sphi %s1027_s19, %s1202_s19   ;;  %s959_s18 = sphi %s1025_s18, %s1201_s18  }
   0x6   : > { %s27_s28 = sadd.s32 1, %s979_s23  ;;  %s30_s29 = sadd.s32 1, %s983_s24 }
   0x7   : > { %p28_p0 = scmp.ge.s32.totalorder %s27_s28, 4  ;;  %p172_p1 = scmp.ne.s32.totalorder %s967_s20, %s963_s19 }
   0x8   : > { %p173_p2 = scmp.eq.s32.totalorder %s746_s26, 7  ;;  %p178_p4 = scmp.ne.s32.totalorder %s963_s19, %s959_s18 }
   0x9   : > { %s1209_s28 = smov (%p28_p0, %s27_s28), 0  ;;  %s1211_s29 = smov (!%p28_p0, %s30_s29), %s983_s24 }
   0xa   : > { %p1074_p3 = por %p173_p2, %p172_p1  ;;  %p32_p5 = scmp.ge.s32.totalorder %s1211_s29, 2 }
   0xb   : > { %p179_p6 = scmp.eq.s32.totalorder %s747_s27, 7  ;;  %p750_p7 = scmp.ge.s32.totalorder %s987_s25, 1 }
   0xc   : > { %p228_p8 = scmp.lt.s32.totalorder %s987_s25, 9  ;;  %s1213_s29 = smov (%p32_p5, %s1211_s29), 0 }
   0xd   : > { %p1084_p9 = por %p179_p6, %p178_p4  ;;  %s159_s7 = ssub.s32 %s983_s24, %s1213_s29 }
   0xe   : > { %p229_p10 = pnand %p750_p7, %p228_p8  ;;  %s162_s8 = sadd.s32 1, %s967_s20 }
   0xf   : > { %p160_p11 = scmp.eq.s32.totalorder %s159_s7, 0  ;;  %s264_s10 = sand.u32 (!%p229_p10), 1, %s963_s19   ;;  %v989_v0 = vmov (!%p229_p10), 0.0|0.0   ;;  %vm990_vm0 = vmmov (!%p229_p10), 0   ;;  %v991_v1 = vmov (!%p229_p10), 0.0   ;;  %vm296_vm1 = vcmask (!%p229_p10), 261120  }
  0x10   : > { %232 = sbr.rel (%p229_p10) target bundleno = 1356 (0x54c), region = 40  ;;  %p271_p12 = scmp.lt.s32.totalorder (!%p229_p10), %s971_s21, 3  ;;  %807 = vmatprep.subr.bf16.mxu0 (!%p229_p10), %v989_v0  ;;  %789 = vmatprep.mubr.msk.f32.mxu0 (!%p229_p10), %vm990_vm0, %v991_v1  ;;  %vm373_vm2 = vcmask (!%p229_p10), 64512  }
  0x11   : > { %s1092_s9 = scalar_select %p160_p11, %s967_s20, %s162_s8  }
  0x12   : > { %s1098_s11 = sshll.u32 (!%p229_p10), %s264_s10, 3  ;;  %p267_p13 = scmp.lt.s32.totalorder (!%p229_p10), %s975_s22, 1  ;;  %792 = vmatprep.subr.mxu1 (!%p229_p10), %v991_v1  ;;  %794 = vmatprep.mubr.msk.f32.mxu1 (!%p229_p10), %vm990_vm0, %v991_v1 }
  0x13   : > { %p762_p0 = scmp.ne.s32.totalorder (!%p229_p10), %s971_s21, 0 }
  0x17   : > { %s1104_s12 = scalar_select %p271_p12, %s971_s21, 3 }
  0x18   : > { %s268_s13 = scalar_select %p267_p13, %s975_s22, 1 }
  0x19   : > { %s769_s14 = sshll.u32 %s1104_s12, 5  ;;  %s278_s16 = scalar_lea.vmem %s1195_s2, %s1104_s12  ;;  %v763_v31 = vld [vmem:[%s1197_s4] ss:$0 sm:$0xff] (!%p762_p0) }
  0x1a   : > { %s275_s17 = scalar_lea.vmem %s1194_s1, %s769_s14  ;;  %s752_s26 = sshll.u32 %s268_s13, 3  ;;  %v756_v9 = vld [vmem:[%s278_s16] ss:$0 sm:$0xff]  ;;  %619 = vst.msk [vmem:[#allocation2] sm:$0xff] (!%p762_p0), %vm296_vm1, %v763_v31 }
  0x1b   : > { %v284_v2 = vld [vmem:[%s275_s17] sm:$0xff]  ;;  %v285_v3 = vld [vmem:[%s275_s17 + $0x8] sm:$0xff]  ;;  %v286_v4 = vld [vmem:[%s275_s17 + $0x10] sm:$0xff]  ;;  %s270_s8 = scalar_lea.vmem %s1193_s0, %s752_s26  ;;  %s992_s13 = smov 120  }
  0x1c   : > { %v808_v5 = vpack.c.bf16 %v285_v3, %v284_v2  ;;  %v287_v6 = vld [vmem:[%s275_s17 + $0x18] sm:$0xff]  ;;  %v283_v8 = vld [vmem:[%s270_s8] sm:$0xff]  ;;  %s993_s17 = smov 112   ;;  %s755_s26 = sshll.u32 %s1104_s12, 3 }
  0x1d   : > { %v811_v7 = vpack.c.bf16 %v287_v6, %v286_v4  ;;  %s282_s8 = scalar_lea.vmem %s1196_s3, %s755_s26  ;;  %s266_s12 = scalar_lea.vmem [#allocation3], %s1098_s11 }
  0x1e   : > { %809 = vmatpush3.bf16.msra.mxu0 %v808_v5  ;;  %v289_v22 = vld [vmem:[%s282_s8] sm:$0xff] }
  0x1f   : > { %810 = vmatprep.subr.bf16.mxu0 %v989_v0 }
  0x22   : > { %812 = vmatpush3.bf16.msra.mxu0 %v811_v7 }
  0x23   : > { %802 = vmatprep.subr.mxu0 %v991_v1 }
  0x25   : > { %790 = vmatmul.mubr.msk.f32.vlgmr.msra.gmra.mrb[0].mxu0 %vm296_vm1, %v283_v8 }
  0x26   : > { %804 = vmatprep.mubr.msk.f32.mxu0 %vm990_vm0, %v991_v1  ;;  %803 = vmatpush3.msra.mxu0 %v289_v22 }
  0xf8   : > { %v366_v10 = vpop.f32.mrb[0].mxu0 }
  0xf9   : > { %v367_v11 = vadd.f32 %v756_v9, %v366_v10  ;;  %v791_v12 = vpop.f32.mrb[1].mxu0 }
  0xfb   : > { %371 = vrot.lane.b32.xlu0 %v367_v11, %s992_s13 }
 0x16d   : > { %v372_v13 = vpop.permute.xlu0 %371 }
 0x16e   : > { %793 = vmatpush3.xpose.msk.msra.mxu1 %vm373_vm2, %v372_v13 }
 0x16f   : > { %797 = vmatprep.subr.mxu1 %v991_v1 }
 0x171   : > { %795 = vmatmul.mubr.msk.f32.vlgmr.msra.gmra.mrb[0].mxu1 %vm373_vm2, %v367_v11 }
 0x172   : > { %799 = vmatprep.mubr.msk.f32.mxu1 %vm990_vm0, %v991_v1 }
 0x244   : > { %v444_v14 = vpop.f32.mrb[0].mxu1 }
 0x245   : > { %v796_v15 = vpop.f32.mrb[1].mxu1  ;;  %v448_v16 = vsel %vm373_vm2, %v444_v14, -inf }
 0x246   : > { %449 = vmax.xlane.f32.xlu0 %v448_v16 }
 0x2d3   : > { %v450_v17 = vpop.xlane.xlu0 %449 }
 0x2d4   : > { %v451_v18 = vsub.f32 %v444_v14, %v450_v17 }
 0x2d6   : > { %v452_v19 = vmul.f32 1.442695, %v451_v18 }
 0x2d8   : > { %889 = vpow2.f32 %v452_v19 }
 0x2e2   : > { %v890_v20 = vpop.eup %889 }
 0x2e3   : > { %v454_v21 = vsel %vm373_vm2, %v890_v20, 0.0 }
 0x2e4   : > { %455 = vadd.xlane.f32.xlu1 %v454_v21 }
 0x2f5   : > { %459 = vrot.lane.b32.xlu1 %v367_v11, %s993_s17 }
 0x371   : > { %v456_v23 = vpop.xlane.xlu1 %455 }
 0x372   : > { %891 = vrcp.f32 %v456_v23 }
 0x375   : > { %v460_v24 = vpop.permute.xlu1 %459 }
 0x376   : > { %798 = vmatpush3.msra.mxu1 %v460_v24 }
 0x37c   : > { %v892_v25 = vpop.eup %891 }
 0x37d   : > { %v458_v26 = vmul.f32 %v892_v25, %v890_v20 }
 0x37f   : > { %800 = vmatmul.mubr.msk.f32.vlgmr.msra.gmra.mrb[2].mxu1 %vm373_vm2, %v458_v26 }
 0x452   : > { %v531_v27 = vpop.f32.mrb[2].mxu1 }
 0x453   : > { %v801_v28 = vpop.f32.mrb[3].mxu1  ;;  %805 = vmatmul.mubr.msk.f32.vlgmr.msra.gmra.mrb[2].mxu0 %vm373_vm2, %v531_v27 }
 0x521   : > { %611 = sbr.rel (%p762_p0) target bundleno = 1320 (0x528), region = 44 }
 0x526   : > { %v604_v29 = vpop.f32.mrb[2].mxu0 }
 0x527   : > { %v806_v30 = vpop.f32.mrb[3].mxu0 }
 0x528 PF: > { %v620_v32 = vld [vmem:[#allocation2] sm:$0xff]  ;;  %p764_p1 = scmp.ne.s32.totalorder %s971_s21, 3 }
 0x529   : > { %v621_v33 = vadd.f32 %v620_v32, %v604_v29 }
 0x52a   : > { %626 = sbr.rel (%p764_p1) target bundleno = 1332 (0x534), region = 48 }
 0x52b   : > { %622 = vst.msk [vmem:[#allocation2] sm:$0xff] %vm296_vm1, %v621_v33 }
 0x532   : > { %v627_v34 = vld [vmem:[#allocation2] sm:$0xff] }
 0x533   : > { %628 = vst.msk [vmem:[%s266_s12] sm:$0xff] %vm296_vm1, %v627_v34 }
 0x534 PF: > { %s766_s11 = sshll.u32 %s975_s22, 7  ;;  %s643_s26 = sshll.u32 %s266_s12, 4  ;;  %s644_s26 = int_to_ptr.vmem [resolvable:$true] %s643_s26 }
 0x535   : > { %s1144_s17 = scalar_lea.hbm %s1198_s5, %s766_s11  ;;  %s630_s27 = scalar_lea.sflag [#allocation4], %s264_s10 }
 0x536   : > { %s893_s7 = scalar_lea.vmem %s644_s26, 128  ;;  %s994_s21 = smov [#allocation3]  }
 0x537   : > { %p894_p2 = scmp.ne.s32.totalorder %s644_s26, %s893_s7  ;;  %s897_s8 = sshll.u32 %s994_s21, 4  ;;  %s898_s8 = int_to_ptr.vmem [resolvable:$false] %s897_s8 }
 0x538   : > { %s899_s14 = scalar_lea.vmem %s898_s8, 256  ;;  %p900_p6 = scmp.lt.s32.totalorder %s644_s26, %s898_s8 }
 0x539   : > { %p895_p4 = pnand %p894_p2, %p1074_p3  ;;  %p901_p7 = scmp.lt.s32.totalorder %s899_s14, %s893_s7 }
 0x53b   : > { %p896_p5 = pneg %p895_p4  ;;  %p902_p8 = por %p901_p7, %p900_p6 }
 0x53d   : > { %p903_p10 = pnand %p902_p8, %p896_p5 }
 0x53f   : > { %906 = shalt.err (!%p903_p10)
}
 0x540   : > { %s907_s22 = scalar_lea.hbm %s1144_s17, 128  ;;  %s911_s15 = scalar_lea.hbm %s1198_s5, 256 }
 0x541   : > { %p908_p11 = scmp.ne.s32.totalorder %s1144_s17, %s907_s22  ;;  %p912_p0 = scmp.lt.u32.totalorder %s1144_s17, %s1198_s5 }
 0x542   : > { %p913_p1 = scmp.lt.u32.totalorder %s911_s15, %s907_s22  ;;  %p915_p4 = scmp.lt.u32.totalorder %s907_s22, %s1144_s17 }
 0x543   : > { %p909_p12 = pnand %p908_p11, %p1074_p3 }
 0x544   : > { %p914_p2 = por %p913_p1, %p912_p0 }
 0x545   : > { %p910_p13 = pneg %p909_p12 }
 0x546   : > { %p916_p5 = por %p915_p4, %p914_p2 }
 0x548   : > { %p917_p6 = pnand %p916_p5, %p910_p13 }
 0x54a   : > { %920 = shalt.err (!%p917_p6)
}
 0x54b   : > { %813 = dma.vmem_to_hbm [thread:$0]  (%p1074_p3), %s644_s26, 128, %s1144_s17, %s630_s27  }
 0x54c PF: > { %p819_p7 = scmp.ge.s32.totalorder %s987_s25, 2  ;;  %s655_s13 = sand.u32 1, %s959_s18  }
 0x54d   : > { %s656_s7 = scalar_lea.sflag [#allocation4], %s655_s13 }
 0x54e   : > { %p816_p8 = pnand %p819_p7, %p1084_p9 }
 0x550   : > { %954 = dma.done.wait (!%p816_p8), %s656_s7, 128  }
 0x551   : > { %956 = vsyncadd (!%p816_p8), %s656_s7, 4294967168  ;;  %s18_s25 = sadd.s32 1, %s987_s25   ;;  %s1201_s18 = smov %s963_s19 }
 0x552   : > { %p15_p10 = scmp.ge.s32.totalorder %s18_s25, 10   ;;  %s1202_s19 = smov %s967_s20 }
 0x553   : > { %s1203_s20 = smov %s1092_s9  ;;  %s1204_s21 = smov %s979_s23 }
 0x554   : > { %s1205_s22 = smov %s983_s24  ;;  %s1206_s23 = smov %s1209_s28 }
 0x555   : > { %s1207_s24 = smov %s1213_s29  ;;  %17 = sbr.rel (!%p15_p10) target bundleno = 5 (0x5), region = 92 }
 0x55c   :  { %661 = vsyncpa [#allocation4], 1 }
 0x55d   :  { %663 = vsyncpa [#allocation4 + $0x1], 1 }

</bundles_post_ra>
